<compile_context>
chip_gen: v5e
topology: v5e:2x2
jax: 0.10.0
libtpu: 0.0.40
codegen_flags: <defaults>
</compile_context>

<pallas_src>
import functools

import jax
import jax.numpy as jnp
from jax.experimental import pallas as pl
from jax.experimental.pallas import tpu as pltpu


def _dice_partials_kernel(preds_ref, labels_ref, out_ref, *, tile, total, ragged):
    # preds_ref : (1, C, tile)        float block (f32 or bf16 on the wire)
    # labels_ref: (1, 1, tile)        small-int class labels
    # out_ref   : (1, 3, C, 128) f32  VMEM-resident accumulator across the
    #             innermost (spatial) grid axis; rows: inter, pred_sum, tgt_sum
    t = pl.program_id(2)

    @pl.when(t == 0)
    def _init():
        out_ref[...] = jnp.zeros_like(out_ref)

    preds = preds_ref[0].astype(jnp.float32)       # (C, tile), accumulate f32
    labels = labels_ref[0].astype(jnp.int32)       # (1, tile)
    num_classes = preds.shape[0]
    lanes = out_ref.shape[-1]

    # One-hot via a tiny (C,1) iota column broadcast against the (1,T) label
    # row (no full (C,T) iota materialized each step).
    class_col = jax.lax.broadcasted_iota(jnp.int32, (num_classes, 1), 0)

    def accumulate(p, lab):
        eq = lab == class_col                                          # (C,T) bool
        inter = jnp.sum(jnp.where(eq, p, 0.0), axis=-1, keepdims=True)  # (C,1)
        psum = jnp.sum(p, axis=-1, keepdims=True)                       # (C,1)
        tsum = jnp.sum(jnp.where(eq, 1.0, 0.0), axis=-1, keepdims=True)  # (C,1)
        # Lane-dense accumulation (tiny per-step work on a (C,128) slab).
        out_ref[0, 0] += jnp.broadcast_to(inter, (num_classes, lanes))
        out_ref[0, 1] += jnp.broadcast_to(psum, (num_classes, lanes))
        out_ref[0, 2] += jnp.broadcast_to(tsum, (num_classes, lanes))

    if not ragged:
        # Statically known: every tile is fully in-bounds -> no masking at all.
        accumulate(preds, labels)
    else:
        s = pl.program_id(0)
        n_half = pl.num_programs(2)
        start = (s * n_half + t) * tile            # global lane offset (int32)
        in_bounds = (start + tile) <= total

        @pl.when(in_bounds)
        def _full_tile():
            accumulate(preds, labels)

        @pl.when(jnp.logical_not(in_bounds))
        def _tail_tile():
            # Ragged last tile / phantom tile: mask out-of-range lanes.
            pos = start + jax.lax.broadcasted_iota(jnp.int32, (1, tile), 1)
            valid = pos < total
            accumulate(jnp.where(valid, preds, 0.0),
                       jnp.where(valid, labels, -1))   # -1 matches no class


def dice_loss_2d(preds, targets, num_classes, *, stream_dtype=None,
                 max_tile_lanes=None, interpret=False):
    """Pallas equivalent of DiceLoss2D.forward(preds, targets).

    preds  : (B, C, H, W) float   (C == num_classes; no activation applied)
    targets: (B, 1, H, W) integer class labels in [0, num_classes)
    stream_dtype: optionally stream preds in this dtype (e.g. jnp.bfloat16)
                  to halve HBM traffic; accumulation stays in f32.
    """
    B, C, H, W = preds.shape
    assert C == num_classes, "preds channel dim must equal num_classes"
    assert targets.shape == (B, 1, H, W)
    total = H * W

    preds_flat = preds.reshape(B, C, total)                 # view, no copy
    if stream_dtype is not None and preds_flat.dtype != jnp.dtype(stream_dtype):
        preds_flat = preds_flat.astype(stream_dtype)

    labels = targets.reshape(B, 1, total)                   # view, no copy
    if (not jnp.issubdtype(labels.dtype, jnp.integer)) or labels.dtype.itemsize > 4:
        labels = labels.astype(jnp.int32)                   # keep int8/16/32 as-is

    # ---- VMEM-aware tile sizing ------------------------------------------
    try:
        vmem_cap = int(pltpu.get_tpu_info().vmem_capacity_bytes)
    except Exception:
        vmem_cap = 64 * 1024 * 1024                         # conservative (v7x)
    budget = vmem_cap // 2                                   # 32 MiB v7x, 64 MiB v5e/v6e
    vmem_limit = vmem_cap * 3 // 4

    pred_bytes = jnp.dtype(preds_flat.dtype).itemsize
    label_bytes = jnp.dtype(labels.dtype).itemsize
    # double-buffered inputs + ~4 f32 C-row temporaries inside the kernel
    per_lane = 2 * (C * pred_bytes + label_bytes) + 4 * C * 4
    tile_cap = max(128, (budget // per_lane) // 128 * 128)
    if max_tile_lanes is not None:
        tile_cap = max(128, min(tile_cap, max_tile_lanes // 128 * 128))

    if total <= tile_cap:
        tile, n_tiles = total, 1                 # single full-row tile per (b)
    else:
        tile = tile_cap                          # multiple of 128
        n_tiles = pl.cdiv(total, tile)           # last tile may be ragged

    # 2-way spatial split so both v7x TensorCores work even for B == 1.
    n_splits = 2 if n_tiles >= 2 else 1
    n_half = pl.cdiv(n_tiles, n_splits)
    # Any ragged tail or phantom tile (odd n_tiles) needs in-kernel masking.
    ragged = (n_splits * n_half * tile) > total

    last_blk = n_tiles - 1

    def spatial_idx(s, t):
        # Clamp so the DMA never starts past the array end (phantom tiles are
        # re-reads of the last real block, fully masked in-kernel).
        return jnp.minimum(s * n_half + t, last_blk)

    kernel = functools.partial(_dice_partials_kernel,
                               tile=tile, total=total, ragged=ragged)

    out = pl.pallas_call(
        kernel,
        out_shape=jax.ShapeDtypeStruct((n_splits * B, 3, C, 128), jnp.float32),
        grid_spec=pltpu.PrefetchScalarGridSpec(
            num_scalar_prefetch=0,
            grid=(n_splits, B, n_half),
            in_specs=[
                pl.BlockSpec((1, C, tile), lambda s, b, t: (b, 0, spatial_idx(s, t))),
                pl.BlockSpec((1, 1, tile), lambda s, b, t: (b, 0, spatial_idx(s, t))),
            ],
            out_specs=pl.BlockSpec((1, 3, C, 128),
                                   lambda s, b, t: (s * B + b, 0, 0, 0)),
        ),
        compiler_params=pltpu.CompilerParams(
            dimension_semantics=("parallel", "parallel", "arbitrary"),
            vmem_limit_bytes=vmem_limit,
        ),
        interpret=interpret,
    )(preds_flat, labels)

    # ---- tiny epilogue: combine the split halves, dice + mean over (b, c)
    stats = out[..., 0].reshape(n_splits, B, 3, C).sum(axis=0)    # (B, 3, C)
    inter, psum, tsum = stats[:, 0], stats[:, 1], stats[:, 2]
    smooth = 1e-6
    dice = (2.0 * inter + smooth) / (psum + tsum + smooth)
    return jnp.mean(1.0 - dice)


def _dice_loss_ref(preds, targets, num_classes):
    """Pure-JAX reference matching the PyTorch module."""
    smooth = 1e-6
    t = targets[:, 0]                                           # (B, H, W)
    onehot = jax.nn.one_hot(t, num_classes, dtype=jnp.float32)   # (B, H, W, C)
    onehot = jnp.transpose(onehot, (0, 3, 1, 2))                 # (B, C, H, W)
    preds = preds.astype(jnp.float32)
    inter = jnp.sum(preds * onehot, axis=(2, 3))
    psum = jnp.sum(preds, axis=(2, 3))
    tsum = jnp.sum(onehot, axis=(2, 3))
    dice = (2.0 * inter + smooth) / (psum + tsum + smooth)
    return jnp.mean(1.0 - dice)


if __name__ == "__main__":
    key = jax.random.PRNGKey(0)
    kp, kt = jax.random.split(key)

    # Inputs consistent with the module: preds are class probabilities (the
    # activation is NOT part of the loss), targets are integer labels.
    B, C, H, W = 2, 4, 16, 16
    logits = jax.random.normal(kp, (B, C, H, W), dtype=jnp.float32)
    preds = jax.nn.softmax(logits, axis=1)
    targets = jax.random.randint(kt, (B, 1, H, W), 0, C, dtype=jnp.int32)

    loss = jax.block_until_ready(dice_loss_2d(preds, targets, C))
    ref = jax.block_until_ready(_dice_loss_ref(preds, targets, C))
    assert jnp.allclose(loss, ref, rtol=1e-5, atol=1e-5), (loss, ref)

    # Exercise the tiled / 2-way-split / ragged-tail / phantom-tile path
    # (spatial size not a multiple of 128, several tiles, odd tile count).
    H2, W2 = 16, 18
    logits2 = jax.random.normal(kp, (B, C, H2, W2), dtype=jnp.float32)
    preds2 = jax.nn.softmax(logits2, axis=1)
    targets2 = jax.random.randint(kt, (B, 1, H2, W2), 0, C, dtype=jnp.int32)
    loss2 = jax.block_until_ready(
        dice_loss_2d(preds2, targets2, C, max_tile_lanes=128))
    ref2 = jax.block_until_ready(_dice_loss_ref(preds2, targets2, C))
    assert jnp.allclose(loss2, ref2, rtol=1e-5, atol=1e-5), (loss2, ref2)

    # Optional bf16 streaming of preds (halved HBM traffic; f32 accumulation).
    loss3 = jax.block_until_ready(
        dice_loss_2d(preds, targets, C, stream_dtype=jnp.bfloat16))
    assert jnp.allclose(loss3, ref, rtol=1e-2, atol=1e-2), (loss3, ref)

    print("KERNEL_OK")
</pallas_src>

<mosaic_0001>
module attributes {stable_mosaic.version = 11 : i64} {
  func.func @_dice_partials_kernel(%arg0: i32, %arg1: i32, %arg2: i32, %arg3: memref<1x4x256xf32, #tpu.memory_space<vmem>>, %arg4: memref<1x1x256xi32, #tpu.memory_space<vmem>>, %arg5: memref<1x3x4x128xf32, #tpu.memory_space<vmem>>) attributes {dimension_semantics = [#tpu.dimension_semantics<parallel>, #tpu.dimension_semantics<parallel>, #tpu.dimension_semantics<arbitrary>], iteration_bounds = array<i64: 1, 2, 1>, scalar_prefetch = 0 : i64, scratch_operands = 0 : i64, tpu.core_type = #tpu.core_type<tc>, window_params = [{transform_indices = @transform_0, window_bounds = array<i64: 1, 4, 256>}, {transform_indices = @transform_1, window_bounds = array<i64: 1, 1, 256>}, {transform_indices = @transform_2, window_bounds = array<i64: 1, 3, 4, 128>}]} {
    %c0_i32 = arith.constant 0 : i32
    %0 = arith.cmpi eq, %arg2, %c0_i32 : i32
    %1 = arith.extui %0 : i1 to i32
    %c0_i32_0 = arith.constant 0 : i32
    %2 = arith.cmpi ne, %1, %c0_i32_0 : i32
    scf.if %2 {
      %cst_33 = arith.constant 0.000000e+00 : f32
      %46 = vector.broadcast %cst_33 : f32 to vector<1x3x4x128xf32>
      %c0_34 = arith.constant 0 : index
      %c0_35 = arith.constant 0 : index
      %c0_36 = arith.constant 0 : index
      %c0_37 = arith.constant 0 : index
      %47 = vector.load %arg5[%c0_34, %c0_35, %c0_36, %c0_37] : memref<1x3x4x128xf32, #tpu.memory_space<vmem>>, vector<1x3x4x128xf32>
      tpu.vector_store %arg5[%c0_34, %c0_35, %c0_36, %c0_37], %46 {strides = array<i32>} : memref<1x3x4x128xf32, #tpu.memory_space<vmem>>, vector<1x3x4x128xf32>,
    } else {
    }
    %c0 = arith.constant 0 : index
    %c0_1 = arith.constant 0 : index
    %c0_2 = arith.constant 0 : index
    %3 = vector.load %arg3[%c0, %c0_1, %c0_2] : memref<1x4x256xf32, #tpu.memory_space<vmem>>, vector<1x4x256xf32>
    %4 = vector.shape_cast %3 : vector<1x4x256xf32> to vector<4x256xf32>
    %c0_3 = arith.constant 0 : index
    %c0_4 = arith.constant 0 : index
    %c0_5 = arith.constant 0 : index
    %5 = vector.load %arg4[%c0_3, %c0_4, %c0_5] : memref<1x1x256xi32, #tpu.memory_space<vmem>>, vector<1x1x256xi32>
    %6 = vector.shape_cast %5 : vector<1x1x256xi32> to vector<1x256xi32>
    %7 = tpu.iota {dimensions = array<i32: 0>} : vector<4x1xi32>
    %8 = vector.broadcast %6 : vector<1x256xi32> to vector<4x256xi32>
    %9 = vector.broadcast %7 : vector<4x1xi32> to vector<4x256xi32>
    %10 = arith.cmpi eq, %8, %9 : vector<4x256xi32>
    %cst = arith.constant 0.000000e+00 : f32
    %11 = vector.broadcast %cst : f32 to vector<4x256xf32>
    %12 = arith.select %10, %4, %11 : vector<4x256xi1>, vector<4x256xf32>
    %cst_6 = arith.constant dense<0.000000e+00> : vector<4xf32>
    %13 = vector.multi_reduction <add>, %12, %cst_6 [1] : vector<4x256xf32> to vector<4xf32>
    %14 = vector.shape_cast %13 : vector<4xf32> to vector<4x1xf32>
    %cst_7 = arith.constant dense<0.000000e+00> : vector<4xf32>
    %15 = vector.multi_reduction <add>, %4, %cst_7 [1] : vector<4x256xf32> to vector<4xf32>
    %16 = vector.shape_cast %15 : vector<4xf32> to vector<4x1xf32>
    %cst_8 = arith.constant 1.000000e+00 : f32
    %cst_9 = arith.constant 0.000000e+00 : f32
    %17 = vector.broadcast %cst_8 : f32 to vector<4x256xf32>
    %18 = vector.broadcast %cst_9 : f32 to vector<4x256xf32>
    %19 = arith.select %10, %17, %18 : vector<4x256xi1>, vector<4x256xf32>
    %cst_10 = arith.constant dense<0.000000e+00> : vector<4xf32>
    %20 = vector.multi_reduction <add>, %19, %cst_10 [1] : vector<4x256xf32> to vector<4xf32>
    %21 = vector.shape_cast %20 : vector<4xf32> to vector<4x1xf32>
    %c0_11 = arith.constant 0 : index
    %c0_12 = arith.constant 0 : index
    %c0_13 = arith.constant 0 : index
    %c0_14 = arith.constant 0 : index
    %22 = vector.load %arg5[%c0_11, %c0_12, %c0_13, %c0_14] : memref<1x3x4x128xf32, #tpu.memory_space<vmem>>, vector<1x1x4x128xf32>
    %23 = vector.shape_cast %22 : vector<1x1x4x128xf32> to vector<4x128xf32>
    %24 = vector.shape_cast %14 : vector<4x1xf32> to vector<4x1xf32>
    %25 = vector.broadcast %24 : vector<4x1xf32> to vector<4x128xf32>
    %26 = arith.addf %23, %25 : vector<4x128xf32>
    %c0_15 = arith.constant 0 : index
    %c0_16 = arith.constant 0 : index
    %c0_17 = arith.constant 0 : index
    %c0_18 = arith.constant 0 : index
    %27 = vector.load %arg5[%c0_15, %c0_16, %c0_17, %c0_18] : memref<1x3x4x128xf32, #tpu.memory_space<vmem>>, vector<1x1x4x128xf32>
    %28 = vector.shape_cast %27 : vector<1x1x4x128xf32> to vector<4x128xf32>
    %29 = vector.shape_cast %26 : vector<4x128xf32> to vector<1x1x4x128xf32>
    tpu.vector_store %arg5[%c0_15, %c0_16, %c0_17, %c0_18], %29 {strides = array<i32>} : memref<1x3x4x128xf32, #tpu.memory_space<vmem>>, vector<1x1x4x128xf32>,
    %c0_19 = arith.constant 0 : index
    %c1 = arith.constant 1 : index
    %c0_20 = arith.constant 0 : index
    %c0_21 = arith.constant 0 : index
    %30 = vector.load %arg5[%c0_19, %c1, %c0_20, %c0_21] : memref<1x3x4x128xf32, #tpu.memory_space<vmem>>, vector<1x1x4x128xf32>
    %31 = vector.shape_cast %30 : vector<1x1x4x128xf32> to vector<4x128xf32>
    %32 = vector.shape_cast %16 : vector<4x1xf32> to vector<4x1xf32>
    %33 = vector.broadcast %32 : vector<4x1xf32> to vector<4x128xf32>
    %34 = arith.addf %31, %33 : vector<4x128xf32>
    %c0_22 = arith.constant 0 : index
    %c1_23 = arith.constant 1 : index
    %c0_24 = arith.constant 0 : index
    %c0_25 = arith.constant 0 : index
    %35 = vector.load %arg5[%c0_22, %c1_23, %c0_24, %c0_25] : memref<1x3x4x128xf32, #tpu.memory_space<vmem>>, vector<1x1x4x128xf32>
    %36 = vector.shape_cast %35 : vector<1x1x4x128xf32> to vector<4x128xf32>
    %37 = vector.shape_cast %34 : vector<4x128xf32> to vector<1x1x4x128xf32>
    tpu.vector_store %arg5[%c0_22, %c1_23, %c0_24, %c0_25], %37 {strides = array<i32>} : memref<1x3x4x128xf32, #tpu.memory_space<vmem>>, vector<1x1x4x128xf32>,
    %c0_26 = arith.constant 0 : index
    %c2 = arith.constant 2 : index
    %c0_27 = arith.constant 0 : index
    %c0_28 = arith.constant 0 : index
    %38 = vector.load %arg5[%c0_26, %c2, %c0_27, %c0_28] : memref<1x3x4x128xf32, #tpu.memory_space<vmem>>, vector<1x1x4x128xf32>
    %39 = vector.shape_cast %38 : vector<1x1x4x128xf32> to vector<4x128xf32>
    %40 = vector.shape_cast %21 : vector<4x1xf32> to vector<4x1xf32>
    %41 = vector.broadcast %40 : vector<4x1xf32> to vector<4x128xf32>
    %42 = arith.addf %39, %41 : vector<4x128xf32>
    %c0_29 = arith.constant 0 : index
    %c2_30 = arith.constant 2 : index
    %c0_31 = arith.constant 0 : index
    %c0_32 = arith.constant 0 : index
    %43 = vector.load %arg5[%c0_29, %c2_30, %c0_31, %c0_32] : memref<1x3x4x128xf32, #tpu.memory_space<vmem>>, vector<1x1x4x128xf32>
    %44 = vector.shape_cast %43 : vector<1x1x4x128xf32> to vector<4x128xf32>
    %45 = vector.shape_cast %42 : vector<4x128xf32> to vector<1x1x4x128xf32>
    tpu.vector_store %arg5[%c0_29, %c2_30, %c0_31, %c0_32], %45 {strides = array<i32>} : memref<1x3x4x128xf32, #tpu.memory_space<vmem>>, vector<1x1x4x128xf32>,
    return
  }
  func.func @transform_0(%arg0: i32, %arg1: i32, %arg2: i32) -> (i32, i32, i32) {
    %c1_i32 = arith.constant 1 : i32
    %0 = arith.muli %arg0, %c1_i32 : i32
    %1 = arith.addi %0, %arg2 : i32
    %c0_i32 = arith.constant 0 : i32
    %2 = arith.minsi %1, %c0_i32 : i32
    %c0_i32_0 = arith.constant 0 : i32
    %c0_i32_1 = arith.constant 0 : i32
    return %arg1, %c0_i32_0, %2 : i32, i32, i32
  }
  func.func @transform_1(%arg0: i32, %arg1: i32, %arg2: i32) -> (i32, i32, i32) {
    %c1_i32 = arith.constant 1 : i32
    %0 = arith.muli %arg0, %c1_i32 : i32
    %1 = arith.addi %0, %arg2 : i32
    %c0_i32 = arith.constant 0 : i32
    %2 = arith.minsi %1, %c0_i32 : i32
    %c0_i32_0 = arith.constant 0 : i32
    %c0_i32_1 = arith.constant 0 : i32
    return %arg1, %c0_i32_0, %2 : i32, i32, i32
  }
  func.func @transform_2(%arg0: i32, %arg1: i32, %arg2: i32) -> (i32, i32, i32, i32) {
    %c2_i32 = arith.constant 2 : i32
    %0 = arith.muli %arg0, %c2_i32 : i32
    %1 = arith.addi %0, %arg1 : i32
    %c0_i32 = arith.constant 0 : i32
    %c0_i32_0 = arith.constant 0 : i32
    %c0_i32_1 = arith.constant 0 : i32
    %c0_i32_2 = arith.constant 0 : i32
    return %1, %c0_i32, %c0_i32_0, %c0_i32_1 : i32, i32, i32, i32
  }
}

</mosaic_0001>

<bundles_post_ra>
// kernel: tpu_custom_call.1
= control target key start
LH: loop header
LB: loop body
LE: loop exit
PB: predicated region body
PF: predicated region fallthrough
CT: control target
= control target key end

     0   :  { %7 = vsyncpa [#allocation3], 0  ;;  %s864_s0 = inlined_call_operand.hbm [shape: f32[2,4,256], index: 0, kind: input, shape index: {}]   ;;  %s865_s1 = inlined_call_operand.hbm [shape: s32[2,1,256], index: 1, kind: input, shape index: {}]   ;;  %s866_s2 = inlined_call_operand.hbm [shape: f32[2,3,4,128], index: 2, kind: output, shape index: {}]  }
   0x1   :  { %9 = vsyncpa [#allocation3 + $0x1], 0 }
   0x2   :  { %10 = vsyncpa [#allocation6], 0 }
   0x3   :  { %12 = vsyncpa [#allocation6 + $0x1], 0 }
   0x4   :  { %13 = vsyncpa [#allocation4], 0 }
   0x5   :  { %15 = vsyncpa [#allocation4 + $0x1], 0  ;;  %s707_s9 = smov 0   ;;  %s709_s10 = smov 0  }
   0x6   :  { %s711_s11 = smov 0   ;;  %s713_s12 = smov 0  }
   0x7   :  { %s715_s13 = smov 0   ;;  %s717_s14 = smov 0  }
   0x8 LB: > { %s449_s15 = sadd.s32 4294967295, %s687_s14   ;;  %s450_s16 = sadd.s32 4294967294, %s687_s14   ;;  %s687_s14 = sphi %s717_s14, %s21_s14   ;;  %s683_s13 = sphi %s715_s13, %s876_s13   ;;  %s679_s12 = sphi %s713_s12, %s875_s12   ;;  %s675_s11 = sphi %s711_s11, %s874_s11   ;;  %s671_s10 = sphi %s709_s10, %s873_s10   ;;  %s667_s9 = sphi %s707_s9, %s872_s9  }
   0x9   : > { %s36_s17 = sadd.s32 1, %s683_s13  ;;  %s55_s18 = sadd.s32 1, %s675_s11 }
   0xa   : > { %p38_p0 = scmp.ge.s32.totalorder %s36_s17, 2  ;;  %p62_p1 = scmp.ne.s32.totalorder %s675_s11, %s671_s10 }
   0xb   : > { %p63_p2 = scmp.eq.s32.totalorder %s687_s14, 0  ;;  %p68_p3 = scmp.ne.s32.totalorder %s671_s10, %s667_s9 }
   0xc   : > { %s878_s17 = smov (%p38_p0, %s36_s17), 0  ;;  %p69_p5 = scmp.eq.s32.totalorder %s449_s15, 0 }
   0xd   : > { %p748_p4 = por %p63_p2, %p62_p1  ;;  %s50_s20 = ssub.s32 %s683_s13, %s878_s17 }
   0xe   : > { %p130_p6 = scmp.eq.s32.totalorder %s449_s15, 1  ;;  %p53_p7 = scmp.eq.s32.totalorder %s50_s20, 0 }
   0xf   : > { %p754_p8 = por %p69_p5, %p68_p3  ;;  %p136_p10 = scmp.eq.s32.totalorder %s450_s16, 1 }
  0x10   : > { %p758_p9 = por %p130_p6, %p62_p1  ;;  %p452_p12 = scmp.ge.s32.totalorder %s687_s14, 2 }
  0x11   : > { %s763_s23 = scalar_select %p53_p7, %s675_s11, %s55_s18  }
  0x12   : > { %p765_p11 = por %p136_p10, %p68_p3  ;;  %p488_p13 = scmp.lt.s32.totalorder %s687_s14, 2 }
  0x13   : > { %s156_s25 = sand.u32 1, %s675_s11   ;;  %s468_s27 = sshll.u32 %s683_s13, 3 }
  0x14   : > { %s453_s26 = sshll.u32 %s156_s25, 3  ;;  %s170_s30 = scalar_lea.hbm %s864_s0, %s468_s27 }
  0x15   : > { %s160_s3 = scalar_lea.vmem [#allocation2], %s453_s26  ;;  %s172_s5 = sshll.u32 %s170_s30, 4  ;;  %s173_s5 = int_to_ptr.hbm [resolvable:$true] %s172_s5 }
  0x16   : > { %s174_s4 = sshll.u32 %s160_s3, 4  ;;  %p778_p0 = pnand %p488_p13, %p748_p4  ;;  %s175_s4 = int_to_ptr.vmem [resolvable:$true] %s174_s4 }
  0x17   : > { %p458_p1 = scmp.ge.s32.totalorder %s687_s14, 1  ;;  %p203_p2 = scmp.lt.s32.totalorder %s687_s14, 3 }
  0x18   : > { %s157_s7 = scalar_lea.sflag [#allocation3], %s156_s25  ;;  %s456_s8 = sshll.u32 %s156_s25, 1 }
  0x19   : > { %480 = dma.hbm_to_vmem [thread:$0]  (!%p778_p0), %s173_s5, 128, %s175_s4, %s157_s7  }
  0x1a   : > { %p204_p3 = pnand %p458_p1, %p203_p2  ;;  %s457_s15 = sshll.u32 %s683_s13, 1 }
  0x1b   : > { %s194_s20 = scalar_lea.hbm %s865_s1, %s457_s15  ;;  %s185_s26 = scalar_lea.vmem [#allocation5], %s456_s8 }
  0x1c   : > { %s198_s19 = sshll.u32 %s185_s26, 4  ;;  %s196_s27 = sshll.u32 %s194_s20, 4  ;;  %s199_s19 = int_to_ptr.vmem [resolvable:$true] %s198_s19  ;;  %s197_s27 = int_to_ptr.hbm [resolvable:$true] %s196_s27 }
  0x1d   : > { %s182_s28 = scalar_lea.sflag [#allocation6], %s156_s25  ;;  %207 = sbr.rel (%p204_p3) target bundleno = 181 (0xb5), region = 28 }
  0x1e   : > { %483 = dma.hbm_to_vmem [thread:$0]  (!%p778_p0), %s197_s27, 32, %s199_s19, %s182_s28  }
  0x1f   : > { %s793_s29 = sand.u32 (!%p204_p3), 1, %s671_s10  }
  0x20   : > { %s459_s30 = sshll.u32 (!%p204_p3), %s793_s29, 3  ;;  %s210_s3 = scalar_lea.sflag (!%p204_p3), [#allocation3], %s793_s29 }
  0x21   : > { %s213_s4 = scalar_lea.vmem (!%p204_p3), [#allocation2], %s459_s30 }
  0x22   : > { %654 = dma.done.wait (%p754_p8), %s210_s3, 128  }
  0x23   : > { %656 = vsyncadd (%p754_p8), %s210_s3, 4294967168  ;;  %s460_s25 = sshll.u32 %s793_s29, 1  ;;  %s220_s5 = scalar_lea.sflag [#allocation6], %s793_s29 }
  0x24   : > { %s223_s6 = scalar_lea.vmem [#allocation5], %s460_s25 }
  0x25   : > { %658 = dma.done.wait (%p754_p8), %s220_s5, 32  }
  0x26   : > { %660 = vsyncadd (%p754_p8), %s220_s5, 4294967264  ;;  %s469_s7 = smul.u32 12, %s793_s29  ;;  %v269_v0 = vlaneseq  ;;  %v689_v1 = vmov 0.0   ;;  %v267_v3 = vld [vmem:[%s213_s4] sm:$0xff]  ;;  %v268_v4 = vld [vmem:[%s223_s6] sm:$0x3] }
  0x27   : > { %v271_v5 = vperm.slane %v268_v4, 0  ;;  %v272_v6 = vperm.slane %v268_v4, 1  ;;  %276 = vst [vmem:[#allocation1] ss:$2 sm:$0xff] %v267_v3  ;;  %vm283_vm2 = vcmask 1043456   ;;  %s470_s21 = smul.u32 12, %s679_s12 }
  0x28   : > { %s808_s8 = scalar_lea.vmem [#allocation7], %s469_s7  ;;  %v270_v2 = vshrl.u32 %v269_v0, 7  ;;  %s318_s19 = scalar_lea.sflag [#allocation4], %s793_s29 }
  0x29   : > { %264 = vst [vmem:[%s808_s8] sm:$0xf] %v689_v1  ;;  %s331_s18 = scalar_lea.hbm %s866_s2, %s470_s21  ;;  %s332_s20 = sshll.u32 %s808_s8, 4  ;;  %s333_s20 = int_to_ptr.vmem [resolvable:$true] %s332_s20 }
  0x2a   : > { %265 = vst [vmem:[%s808_s8 + $0x4] sm:$0xf] %v689_v1  ;;  %vm273_vm0 = vcmp.eq.s32.totalorder %v271_v5, %v270_v2  ;;  %vm274_vm1 = vcmp.eq.s32.totalorder %v272_v6, %v270_v2  ;;  %s334_s26 = sshll.u32 %s331_s18, 4  ;;  %s621_s3 = scalar_lea.hbm %s866_s2, 24  ;;  %s335_s26 = int_to_ptr.hbm [resolvable:$true] %s334_s26 }
  0x2b   : > { %266 = vst [vmem:[%s808_s8 + $0x8] sm:$0xf] %v689_v1  ;;  %v299_v7 = vsel %vm273_vm0, 1.0, %v689_v1  ;;  %v300_v8 = vsel %vm274_vm1, 1.0, %v689_v1  ;;  %s615_s27 = sshra.s32 %s335_s26, 4  ;;  %s616_s27 = int_to_ptr.hbm [resolvable:$true] %s615_s27 }
  0x2c   : > { %v301_v9 = vsel %vm283_vm2, %v299_v7, 0.0  ;;  %v302_v10 = vsel %vm283_vm2, %v300_v8, 0.0  ;;  %s617_s12 = scalar_lea.hbm %s616_s27, 12  ;;  %p622_p7 = scmp.lt.s32.totalorder %s616_s27, %s866_s2 }
  0x2d   : > { %v303_v11 = vadd.f32 %v302_v10, %v301_v9  ;;  %p618_p4 = scmp.ne.s32.totalorder %s616_s27, %s617_s12  ;;  %p623_p8 = scmp.lt.s32.totalorder %s621_s3, %s617_s12 }
  0x2e   : > { %v277_v12 = vld.sshfl [vmem:[#allocation1] sm:$0xff pattern:$0x75316420]  ;;  %v278_v13 = vld.sshfl [vmem:[#allocation1 + $0x8] sm:$0xff pattern:$0x75316420] }
  0x2f   : > { %304 = vadd.xlane.f32.xlu1 %v303_v11  ;;  %v281_v14 = vsel %vm273_vm0, %v277_v12, 0.0  ;;  %v282_v15 = vsel %vm274_vm1, %v278_v13, 0.0  ;;  %289 = vst [vmem:[#allocation1] ss:$2 sm:$0xff] %v267_v3  ;;  %p619_p5 = pnand %p618_p4, %p758_p9  ;;  %p624_p10 = por %p623_p8, %p622_p7 }
  0x30   : > { %v284_v16 = vsel %vm283_vm2, %v281_v14, 0.0  ;;  %v285_v17 = vsel %vm283_vm2, %v282_v15, 0.0  ;;  %v306_v27 = vld [vmem:[%s808_s8] sm:$0xf] }
  0x31   : > { %v286_v18 = vadd.f32 %v285_v17, %v284_v16  ;;  %v461_v30 = vld [vmem:[%s808_s8 + $0x4] sm:$0xf]  ;;  %p620_p6 = pneg %p619_p5 }
  0x32   : > { %v463_v24 = vld [vmem:[%s808_s8 + $0x8] sm:$0xf] }
  0x33   : > { %287 = vadd.xlane.f32.xlu0 %v286_v18  ;;  %p625_p13 = pnand %p624_p10, %p620_p6 }
  0x36   : > { %v290_v19 = vld.sshfl [vmem:[#allocation1] sm:$0xff pattern:$0x75316420]  ;;  %v291_v20 = vld.sshfl [vmem:[#allocation1 + $0x8] sm:$0xff pattern:$0x75316420] }
  0x37   : > { %v294_v21 = vsel %vm283_vm2, %v290_v19, 0.0  ;;  %v295_v22 = vsel %vm283_vm2, %v291_v20, 0.0 }
  0x38   : > { %v296_v23 = vadd.f32 %v295_v22, %v294_v21 }
  0x3b   : > { %297 = vadd.xlane.f32.xlu0 %v296_v23 }
  0xa2   : > { %v305_v25 = vpop.xlane.xlu1 %304 }
  0xa3   : > { %v315_v26 = vadd.f32 %v463_v24, %v305_v25 }
  0xa5   : > { %464 = vst [vmem:[%s808_s8 + $0x8] sm:$0xf] %v315_v26 }
  0xa6   : > { %v288_v28 = vpop.xlane.xlu0 %287 }
  0xa7   : > { %v307_v29 = vadd.f32 %v306_v27, %v288_v28 }
  0xa9   : > { %308 = vst [vmem:[%s808_s8] sm:$0xf] %v307_v29 }
  0xae   : > { %v298_v31 = vpop.xlane.xlu0 %297 }
  0xaf   : > { %v311_v32 = vadd.f32 %v461_v30, %v298_v31 }
  0xb1   : > { %462 = vst [vmem:[%s808_s8 + $0x4] sm:$0xf] %v311_v32 }
  0xb2   : > { %628 = shalt.err (!%p625_p13)
}
  0xb3   : > { %s690_s29 = smov 64   ;;  %s691_s5 = smov 4  }
  0xb4   : > { %475 = dma.vmem_to_hbm [thread:$0]  (%p758_p9), %s333_s20, 192, %s335_s26, %s318_s19, %s690_s29, %s690_s29, %s691_s5  }
  0xb5 PF: > { %s349_s6 = sand.u32 1, %s667_s9   ;;  %p485_p0 = pnand %p452_p12, %p765_p11 }
  0xb6   : > { %s350_s7 = scalar_lea.sflag [#allocation4], %s349_s6 }
  0xb7   : > { %p486_p1 = pneg %p485_p0 }
  0xb9   : > { %662 = dma.done.wait (%p486_p1), %s350_s7, 192  }
  0xba   : > { %664 = vsyncadd (%p486_p1), %s350_s7, 4294967104  ;;  %s21_s14 = sadd.s32 1, %s687_s14   ;;  %s872_s9 = smov %s671_s10 }
  0xbb   : > { %p18_p2 = scmp.ge.s32.totalorder %s21_s14, 4   ;;  %s873_s10 = smov %s675_s11 }
  0xbc   : > { %s874_s11 = smov %s763_s23  ;;  %s875_s12 = smov %s683_s13 }
  0xbd   : > { %s876_s13 = smov %s878_s17  ;;  %20 = sbr.rel (!%p18_p2) target bundleno = 8 (0x8), region = 92 }
  0xc2   :  { %356 = vsyncpa [#allocation3], 1 }
  0xc3   :  { %358 = vsyncpa [#allocation3 + $0x1], 1 }
  0xc4   :  { %359 = vsyncpa [#allocation6], 1 }
  0xc5   :  { %361 = vsyncpa [#allocation6 + $0x1], 1 }
  0xc6   :  { %362 = vsyncpa [#allocation4], 1 }
  0xc7   :  { %364 = vsyncpa [#allocation4 + $0x1], 1 }

</bundles_post_ra>
